<compile_context>
chip_gen: v7x
topology: tpu7x:2x2x1
jax: 0.10.0
libtpu: 0.0.40
codegen_flags: <defaults>
</compile_context>

<pallas_src>
import functools
import math

import jax
import jax.numpy as jnp
from jax import lax
from jax.experimental import pallas as pl
from jax.experimental.pallas import tpu as pltpu


# ------------------------------ fused kernel -------------------------------

def _mha_fused_kernel(vlen_ref,                        # SMEM (B,) int32
                      xq_ref, xk_ref, xv_ref,          # (Bblk, Tq/Tk, D*) f32
                      wq_ref, wk_ref, wv_ref, wo_ref,  # (D*, H) bf16, transposed
                      o_ref,                           # (Bblk, Tq, H) f32
                      ctx_ref,                         # VMEM (Bblk*Tq, H) f32
                      *, num_heads, head_dim):
    g = pl.program_id(0)
    scale = jnp.float32(1.0 / math.sqrt(head_dim))

    Bblk, Tq, Dq = xq_ref.shape
    Tk, Dk = xk_ref.shape[1], xk_ref.shape[2]
    Dv = xv_ref.shape[2]
    H = wq_ref.shape[1]

    # ---- fused Q/K/V projections: batch folded into the matmul M dim -------
    # bf16 operands, f32 accumulation (MXU-native on v6e/v7x).
    xq = xq_ref[...].reshape(Bblk * Tq, Dq).astype(jnp.bfloat16)
    xk = xk_ref[...].reshape(Bblk * Tk, Dk).astype(jnp.bfloat16)
    xv = xv_ref[...].reshape(Bblk * Tk, Dv).astype(jnp.bfloat16)

    q = jnp.dot(xq, wq_ref[...], preferred_element_type=jnp.float32) * scale
    k = jnp.dot(xk, wk_ref[...], preferred_element_type=jnp.float32)
    v = jnp.dot(xv, wv_ref[...], preferred_element_type=jnp.float32)

    # masked_softmax mask: key positions >= valid_len are invalid (per batch).
    # TODO(synk): only 1-D (per-batch) valid_lens supported; d2l's 2-D
    # per-query valid_lens variant is not expressed here.
    col = lax.broadcasted_iota(jnp.int32, (Tq, Tk), 1)          # hoisted

    # ---- per-batch-element, per-head masked attention ----------------------
    # TODO(synk): static loops are fine at Bblk/num_heads this small; switch to
    # lax.fori_loop(..., unroll=True) if num_heads/Tq grow (vreg pressure).
    for bi in range(Bblk):
        vlen = vlen_ref[g * Bblk + bi]
        mask = col < vlen
        qb = q[bi * Tq:(bi + 1) * Tq]                           # (Tq, H)
        kb = k[bi * Tk:(bi + 1) * Tk]                           # (Tk, H)
        vb = v[bi * Tk:(bi + 1) * Tk]                           # (Tk, H)
        for h in range(num_heads):
            # TODO(synk): head_dim=8 uses only 8 of the MXU contraction lanes;
            # larger head_dim (or a VPU path) would raise MXU utilization.
            lo = h * head_dim
            qh = qb[:, lo:lo + head_dim].astype(jnp.bfloat16)   # (Tq, dh)
            kh = kb[:, lo:lo + head_dim].astype(jnp.bfloat16)   # (Tk, dh)
            vh = vb[:, lo:lo + head_dim].astype(jnp.bfloat16)   # (Tk, dh)

            # scores: contract last dims (no materialized transpose).
            s = lax.dot_general(qh, kh, (((1,), (1,)), ((), ())),
                                preferred_element_type=jnp.float32)  # (Tq, Tk)
            s = jnp.where(mask, s, jnp.float32(-1e6))
            s = s - jnp.max(s, axis=-1, keepdims=True)
            p = jnp.exp(s)
            p = p * pl.reciprocal(jnp.sum(p, axis=-1, keepdims=True), approx=True)
            # TODO(synk): dropout omitted (module evaluated in eval mode -> identity).

            ctx = jnp.dot(p.astype(jnp.bfloat16), vh,
                          preferred_element_type=jnp.float32)        # (Tq, dh)
            # Assemble head columns in a VMEM slab (head concat of transpose_output).
            ctx_ref[bi * Tq:(bi + 1) * Tq, lo:lo + head_dim] = ctx

    # ---- single output projection over the whole (Bblk*Tq, H) slab ---------
    out = jnp.dot(ctx_ref[...].astype(jnp.bfloat16), wo_ref[...],
                  preferred_element_type=jnp.float32)                # (Bblk*Tq, H)
    # TODO(synk): H=32 < 128 lanes -> masked stores; real configs should use
    # num_hiddens that is a multiple of 128 for lane-dense unmasked vst.
    o_ref[...] = out.reshape(Bblk, Tq, H).astype(o_ref.dtype)


# ------------------------------ wrapper --------------------------------------

def _pick_block_b(batch, tq, target_rows=256):
    """Largest batch block that (a) divides batch, (b) keeps >= 2 grid steps
    when batch >= 2 (v7x has 2 TensorCores), (c) keeps the fused matmul M dim
    near target_rows."""
    upper = batch if batch < 2 else max(1, batch // 2)
    upper = min(upper, max(1, target_rows // max(tq, 1)))
    for cand in range(max(upper, 1), 0, -1):
        if batch % cand == 0:
            return cand
    return 1


def multi_head_attention(params, queries, keys, values, valid_lens, num_heads,
                         block_b=None):
    """Fused MHA forward.  queries:(B,Tq,Dq), keys:(B,Tk,Dk), values:(B,Tk,Dv),
    valid_lens:(B,) int.  Weights in params use PyTorch (out_features, in_features)."""
    B, Tq, Dq = queries.shape
    Tk, Dk = keys.shape[1], keys.shape[2]
    Dv = values.shape[2]
    H = params["W_q"].shape[0]                 # num_hiddens
    head_dim = H // num_heads

    if block_b is None:
        block_b = _pick_block_b(B, Tq)
    assert B % block_b == 0, "batch must be divisible by the batch block"
    grid_b = B // block_b

    # Pre-transpose weights once and cast to bf16 (MXU operands); every in-kernel
    # matmul is x @ w with lane-dense output columns.
    wq_t = params["W_q"].T.astype(jnp.bfloat16)    # (Dq, H)
    wk_t = params["W_k"].T.astype(jnp.bfloat16)    # (Dk, H)
    wv_t = params["W_v"].T.astype(jnp.bfloat16)    # (Dv, H)
    wo_t = params["W_o"].T.astype(jnp.bfloat16)    # (H, H)

    kernel = functools.partial(_mha_fused_kernel,
                               num_heads=num_heads, head_dim=head_dim)

    grid_spec = pltpu.PrefetchScalarGridSpec(
        num_scalar_prefetch=1,                 # valid_lens -> SMEM
        grid=(grid_b,),
        in_specs=[
            pl.BlockSpec((block_b, Tq, Dq), lambda g, vl: (g, 0, 0)),
            pl.BlockSpec((block_b, Tk, Dk), lambda g, vl: (g, 0, 0)),
            pl.BlockSpec((block_b, Tk, Dv), lambda g, vl: (g, 0, 0)),
            # Weights: constant block index across the grid -> DMA'd once,
            # resident in VMEM for every batch step.
            # TODO(synk): at realistic H (>=1024) single-buffer these
            # (pipeline_mode=pl.Buffered(1)) to halve weight VMEM on v7x (64 MiB).
            pl.BlockSpec((Dq, H), lambda g, vl: (0, 0)),
            pl.BlockSpec((Dk, H), lambda g, vl: (0, 0)),
            pl.BlockSpec((Dv, H), lambda g, vl: (0, 0)),
            pl.BlockSpec((H, H), lambda g, vl: (0, 0)),
        ],
        # Lane-dense (for its size) output: merged heads axis (H) is the last dim.
        out_specs=pl.BlockSpec((block_b, Tq, H), lambda g, vl: (g, 0, 0)),
        scratch_shapes=[pltpu.VMEM((block_b * Tq, H), jnp.float32)],
    )

    return pl.pallas_call(
        kernel,
        grid_spec=grid_spec,
        out_shape=jax.ShapeDtypeStruct((B, Tq, H), jnp.float32),
        compiler_params=pltpu.CompilerParams(
            dimension_semantics=("parallel",),     # v7x: batch blocks split across 2 TCs
            vmem_limit_bytes=32 * 1024 * 1024,     # leave headroom on v7x (64 MiB phys)
        ),
    )(valid_lens.astype(jnp.int32), queries, keys, values,
      wq_t, wk_t, wv_t, wo_t)


# ------------------------------ reference (pure JAX) ------------------------

def transpose_qkv(x, num_heads):
    B, T, Hh = x.shape
    x = x.reshape(B, T, num_heads, Hh // num_heads)
    x = jnp.transpose(x, (0, 2, 1, 3))
    return x.reshape(B * num_heads, T, Hh // num_heads)


def transpose_output(x, num_heads):
    BH, T, dh = x.shape
    x = x.reshape(BH // num_heads, num_heads, T, dh)
    x = jnp.transpose(x, (0, 2, 1, 3))
    return x.reshape(BH // num_heads, T, num_heads * dh)


def reference_mha(params, queries, keys, values, valid_lens, num_heads):
    def proj(x, w):
        return jnp.einsum("btk,hk->bth", x, w)
    q = transpose_qkv(proj(queries, params["W_q"]), num_heads)
    k = transpose_qkv(proj(keys, params["W_k"]), num_heads)
    v = transpose_qkv(proj(values, params["W_v"]), num_heads)
    dh = q.shape[-1]
    scores = jnp.einsum("bqd,bkd->bqk", q, k) / math.sqrt(dh)
    vlens = jnp.repeat(valid_lens.astype(jnp.int32), num_heads, axis=0)
    col = jnp.arange(k.shape[1])[None, None, :]
    scores = jnp.where(col < vlens[:, None, None], scores, -1e6)
    p = jax.nn.softmax(scores, axis=-1)
    out = jnp.einsum("bqk,bkd->bqd", p, v)
    out_concat = transpose_output(out, num_heads)
    return jnp.einsum("bth,oh->bto", out_concat, params["W_o"])


# ----------------------------------- main -----------------------------------

if __name__ == "__main__":
    batch = 2
    num_queries = 8
    num_kv = 8
    query_size = key_size = value_size = 32
    num_hiddens = 32
    num_heads = 4

    key = jax.random.PRNGKey(0)
    k_q, k_k, k_v, k_o, k_x1, k_x2, k_x3 = jax.random.split(key, 7)

    def init_linear(rng, out_f, in_f):
        bound = 1.0 / math.sqrt(in_f)
        return jax.random.uniform(rng, (out_f, in_f), jnp.float32, -bound, bound)

    params = {
        "W_q": init_linear(k_q, num_hiddens, query_size),
        "W_k": init_linear(k_k, num_hiddens, key_size),
        "W_v": init_linear(k_v, num_hiddens, value_size),
        "W_o": init_linear(k_o, num_hiddens, num_hiddens),
    }

    queries = jax.random.normal(k_x1, (batch, num_queries, query_size), jnp.float32)
    keys = jax.random.normal(k_x2, (batch, num_kv, key_size), jnp.float32)
    values = jax.random.normal(k_x3, (batch, num_kv, value_size), jnp.float32)
    valid_lens = jnp.array([3, 5], dtype=jnp.int32)

    out = multi_head_attention(params, queries, keys, values, valid_lens, num_heads)
    out = jax.block_until_ready(out)

    ref = reference_mha(params, queries, keys, values, valid_lens, num_heads)
    assert out.shape == (batch, num_queries, num_hiddens)
    # bf16 MXU operands (f32 accumulation) + approx EUP reciprocal are the only
    # deliberate approximations -> compare against the f32 reference with a
    # correspondingly looser tolerance.
    assert jnp.allclose(out, ref, rtol=2e-2, atol=2e-2), "mismatch vs JAX reference"

    print("KERNEL_OK")
</pallas_src>

<mosaic_0001>
module attributes {stable_mosaic.version = 11 : i64} {
  func.func @_mha_fused_kernel(%arg0: i32, %arg1: memref<2xi32, #tpu.memory_space<smem>>, %arg2: memref<1x8x32xf32, #tpu.memory_space<vmem>>, %arg3: memref<1x8x32xf32, #tpu.memory_space<vmem>>, %arg4: memref<1x8x32xf32, #tpu.memory_space<vmem>>, %arg5: memref<32x32xbf16, #tpu.memory_space<vmem>>, %arg6: memref<32x32xbf16, #tpu.memory_space<vmem>>, %arg7: memref<32x32xbf16, #tpu.memory_space<vmem>>, %arg8: memref<32x32xbf16, #tpu.memory_space<vmem>>, %arg9: memref<1x8x32xf32, #tpu.memory_space<vmem>>, %arg10: memref<8x32xf32, #tpu.memory_space<vmem>>) attributes {dimension_semantics = [#tpu.dimension_semantics<parallel>], iteration_bounds = array<i64: 2>, scalar_prefetch = 1 : i64, scratch_operands = 1 : i64, tpu.core_type = #tpu.core_type<tc>, window_params = [{transform_indices = @transform_0, window_bounds = array<i64: 1, 8, 32>}, {transform_indices = @transform_1, window_bounds = array<i64: 1, 8, 32>}, {transform_indices = @transform_2, window_bounds = array<i64: 1, 8, 32>}, {pipeline_mode = #tpu.pipeline_mode<synchronous>, transform_indices = @transform_3, window_bounds = array<i64: 32, 32>}, {pipeline_mode = #tpu.pipeline_mode<synchronous>, transform_indices = @transform_4, window_bounds = array<i64: 32, 32>}, {pipeline_mode = #tpu.pipeline_mode<synchronous>, transform_indices = @transform_5, window_bounds = array<i64: 32, 32>}, {pipeline_mode = #tpu.pipeline_mode<synchronous>, transform_indices = @transform_6, window_bounds = array<i64: 32, 32>}, {transform_indices = @transform_7, window_bounds = array<i64: 1, 8, 32>}]} {
    %c0 = arith.constant 0 : index
    %c0_0 = arith.constant 0 : index
    %c0_1 = arith.constant 0 : index
    %0 = vector.load %arg2[%c0, %c0_0, %c0_1] : memref<1x8x32xf32, #tpu.memory_space<vmem>>, vector<1x8x32xf32>
    %1 = vector.shape_cast %0 : vector<1x8x32xf32> to vector<8x32xf32>
    %2 = arith.truncf %1 : vector<8x32xf32> to vector<8x32xbf16>
    %c0_2 = arith.constant 0 : index
    %c0_3 = arith.constant 0 : index
    %c0_4 = arith.constant 0 : index
    %3 = vector.load %arg3[%c0_2, %c0_3, %c0_4] : memref<1x8x32xf32, #tpu.memory_space<vmem>>, vector<1x8x32xf32>
    %4 = vector.shape_cast %3 : vector<1x8x32xf32> to vector<8x32xf32>
    %5 = arith.truncf %4 : vector<8x32xf32> to vector<8x32xbf16>
    %c0_5 = arith.constant 0 : index
    %c0_6 = arith.constant 0 : index
    %c0_7 = arith.constant 0 : index
    %6 = vector.load %arg4[%c0_5, %c0_6, %c0_7] : memref<1x8x32xf32, #tpu.memory_space<vmem>>, vector<1x8x32xf32>
    %7 = vector.shape_cast %6 : vector<1x8x32xf32> to vector<8x32xf32>
    %8 = arith.truncf %7 : vector<8x32xf32> to vector<8x32xbf16>
    %c0_8 = arith.constant 0 : index
    %c0_9 = arith.constant 0 : index
    %9 = vector.load %arg5[%c0_8, %c0_9] : memref<32x32xbf16, #tpu.memory_space<vmem>>, vector<32x32xbf16>
    %cst = arith.constant dense<0.000000e+00> : vector<8x32xf32>
    %10 = tpu.matmul %2, %9, %cst {dimension_numbers = #tpu.dot_dimension_numbers<[1], [0], [0], [1], [0, 0, 1, 1], [], []>} : vector<8x32xbf16>, vector<32x32xbf16>, vector<8x32xf32> -> vector<8x32xf32>
    %cst_10 = arith.constant 0.353553385 : f32
    %11 = vector.broadcast %cst_10 : f32 to vector<8x32xf32>
    %12 = arith.mulf %10, %11 : vector<8x32xf32>
    %c0_11 = arith.constant 0 : index
    %c0_12 = arith.constant 0 : index
    %13 = vector.load %arg6[%c0_11, %c0_12] : memref<32x32xbf16, #tpu.memory_space<vmem>>, vector<32x32xbf16>
    %cst_13 = arith.constant dense<0.000000e+00> : vector<8x32xf32>
    %14 = tpu.matmul %5, %13, %cst_13 {dimension_numbers = #tpu.dot_dimension_numbers<[1], [0], [0], [1], [0, 0, 1, 1], [], []>} : vector<8x32xbf16>, vector<32x32xbf16>, vector<8x32xf32> -> vector<8x32xf32>
    %c0_14 = arith.constant 0 : index
    %c0_15 = arith.constant 0 : index
    %15 = vector.load %arg7[%c0_14, %c0_15] : memref<32x32xbf16, #tpu.memory_space<vmem>>, vector<32x32xbf16>
    %cst_16 = arith.constant dense<0.000000e+00> : vector<8x32xf32>
    %16 = tpu.matmul %8, %15, %cst_16 {dimension_numbers = #tpu.dot_dimension_numbers<[1], [0], [0], [1], [0, 0, 1, 1], [], []>} : vector<8x32xbf16>, vector<32x32xbf16>, vector<8x32xf32> -> vector<8x32xf32>
    %17 = tpu.iota {dimensions = array<i32: 1>} : vector<8x8xi32>
    %c1_i32 = arith.constant 1 : i32
    %18 = arith.muli %arg0, %c1_i32 : i32
    %c0_i32 = arith.constant 0 : i32
    %19 = arith.addi %18, %c0_i32 : i32
    %20 = arith.index_cast %19 : i32 to index
    %21 = memref.load %arg1[%20] : memref<2xi32, #tpu.memory_space<smem>>
    %22 = vector.broadcast %21 : i32 to vector<8x8xi32>
    %23 = arith.cmpi slt, %17, %22 : vector<8x8xi32>
    %24 = vector.extract_strided_slice %12 {offsets = [0, 0], sizes = [8, 8], strides = [1, 1]} : vector<8x32xf32> to vector<8x8xf32>
    %25 = arith.truncf %24 : vector<8x8xf32> to vector<8x8xbf16>
    %26 = vector.extract_strided_slice %14 {offsets = [0, 0], sizes = [8, 8], strides = [1, 1]} : vector<8x32xf32> to vector<8x8xf32>
    %27 = arith.truncf %26 : vector<8x8xf32> to vector<8x8xbf16>
    %28 = vector.extract_strided_slice %16 {offsets = [0, 0], sizes = [8, 8], strides = [1, 1]} : vector<8x32xf32> to vector<8x8xf32>
    %29 = arith.truncf %28 : vector<8x8xf32> to vector<8x8xbf16>
    %cst_17 = arith.constant dense<0.000000e+00> : vector<8x8xf32>
    %30 = tpu.matmul %25, %27, %cst_17 {dimension_numbers = #tpu.dot_dimension_numbers<[1], [1], [0], [0], [0, 0, 1, 0], [], []>} : vector<8x8xbf16>, vector<8x8xbf16>, vector<8x8xf32> -> vector<8x8xf32>
    %cst_18 = arith.constant -1.000000e+06 : f32
    %31 = vector.broadcast %cst_18 : f32 to vector<8x8xf32>
    %32 = arith.select %23, %30, %31 : vector<8x8xi1>, vector<8x8xf32>
    %cst_19 = arith.constant dense<0xFF800000> : vector<8xf32>
    %33 = vector.multi_reduction <maximumf>, %32, %cst_19 [1] : vector<8x8xf32> to vector<8xf32>
    %34 = vector.shape_cast %33 : vector<8xf32> to vector<8x1xf32>
    %35 = vector.broadcast %34 : vector<8x1xf32> to vector<8x8xf32>
    %36 = arith.subf %32, %35 : vector<8x8xf32>
    %37 = math.exp %36 : vector<8x8xf32>
    %cst_20 = arith.constant dense<0.000000e+00> : vector<8xf32>
    %38 = vector.multi_reduction <add>, %37, %cst_20 [1] : vector<8x8xf32> to vector<8xf32>
    %39 = vector.shape_cast %38 : vector<8xf32> to vector<8x1xf32>
    %40 = tpu.reciprocal %39 {approx = true} : vector<8x1xf32> -> vector<8x1xf32>
    %41 = vector.broadcast %40 : vector<8x1xf32> to vector<8x8xf32>
    %42 = arith.mulf %37, %41 : vector<8x8xf32>
    %43 = arith.truncf %42 : vector<8x8xf32> to vector<8x8xbf16>
    %cst_21 = arith.constant dense<0.000000e+00> : vector<8x8xf32>
    %44 = tpu.matmul %43, %29, %cst_21 {dimension_numbers = #tpu.dot_dimension_numbers<[1], [0], [0], [1], [0, 0, 1, 1], [], []>} : vector<8x8xbf16>, vector<8x8xbf16>, vector<8x8xf32> -> vector<8x8xf32>
    %c0_22 = arith.constant 0 : index
    %c0_23 = arith.constant 0 : index
    %45 = vector.load %arg10[%c0_22, %c0_23] : memref<8x32xf32, #tpu.memory_space<vmem>>, vector<8x8xf32>
    tpu.vector_store %arg10[%c0_22, %c0_23], %44 {strides = array<i32>} : memref<8x32xf32, #tpu.memory_space<vmem>>, vector<8x8xf32>,
    %46 = vector.extract_strided_slice %12 {offsets = [0, 8], sizes = [8, 8], strides = [1, 1]} : vector<8x32xf32> to vector<8x8xf32>
    %47 = arith.truncf %46 : vector<8x8xf32> to vector<8x8xbf16>
    %48 = vector.extract_strided_slice %14 {offsets = [0, 8], sizes = [8, 8], strides = [1, 1]} : vector<8x32xf32> to vector<8x8xf32>
    %49 = arith.truncf %48 : vector<8x8xf32> to vector<8x8xbf16>
    %50 = vector.extract_strided_slice %16 {offsets = [0, 8], sizes = [8, 8], strides = [1, 1]} : vector<8x32xf32> to vector<8x8xf32>
    %51 = arith.truncf %50 : vector<8x8xf32> to vector<8x8xbf16>
    %cst_24 = arith.constant dense<0.000000e+00> : vector<8x8xf32>
    %52 = tpu.matmul %47, %49, %cst_24 {dimension_numbers = #tpu.dot_dimension_numbers<[1], [1], [0], [0], [0, 0, 1, 0], [], []>} : vector<8x8xbf16>, vector<8x8xbf16>, vector<8x8xf32> -> vector<8x8xf32>
    %cst_25 = arith.constant -1.000000e+06 : f32
    %53 = vector.broadcast %cst_25 : f32 to vector<8x8xf32>
    %54 = arith.select %23, %52, %53 : vector<8x8xi1>, vector<8x8xf32>
    %cst_26 = arith.constant dense<0xFF800000> : vector<8xf32>
    %55 = vector.multi_reduction <maximumf>, %54, %cst_26 [1] : vector<8x8xf32> to vector<8xf32>
    %56 = vector.shape_cast %55 : vector<8xf32> to vector<8x1xf32>
    %57 = vector.broadcast %56 : vector<8x1xf32> to vector<8x8xf32>
    %58 = arith.subf %54, %57 : vector<8x8xf32>
    %59 = math.exp %58 : vector<8x8xf32>
    %cst_27 = arith.constant dense<0.000000e+00> : vector<8xf32>
    %60 = vector.multi_reduction <add>, %59, %cst_27 [1] : vector<8x8xf32> to vector<8xf32>
    %61 = vector.shape_cast %60 : vector<8xf32> to vector<8x1xf32>
    %62 = tpu.reciprocal %61 {approx = true} : vector<8x1xf32> -> vector<8x1xf32>
    %63 = vector.broadcast %62 : vector<8x1xf32> to vector<8x8xf32>
    %64 = arith.mulf %59, %63 : vector<8x8xf32>
    %65 = arith.truncf %64 : vector<8x8xf32> to vector<8x8xbf16>
    %cst_28 = arith.constant dense<0.000000e+00> : vector<8x8xf32>
    %66 = tpu.matmul %65, %51, %cst_28 {dimension_numbers = #tpu.dot_dimension_numbers<[1], [0], [0], [1], [0, 0, 1, 1], [], []>} : vector<8x8xbf16>, vector<8x8xbf16>, vector<8x8xf32> -> vector<8x8xf32>
    %c0_29 = arith.constant 0 : index
    %c8 = arith.constant 8 : index
    %67 = vector.load %arg10[%c0_29, %c8] : memref<8x32xf32, #tpu.memory_space<vmem>>, vector<8x8xf32>
    tpu.vector_store %arg10[%c0_29, %c8], %66 {strides = array<i32>} : memref<8x32xf32, #tpu.memory_space<vmem>>, vector<8x8xf32>,
    %68 = vector.extract_strided_slice %12 {offsets = [0, 16], sizes = [8, 8], strides = [1, 1]} : vector<8x32xf32> to vector<8x8xf32>
    %69 = arith.truncf %68 : vector<8x8xf32> to vector<8x8xbf16>
    %70 = vector.extract_strided_slice %14 {offsets = [0, 16], sizes = [8, 8], strides = [1, 1]} : vector<8x32xf32> to vector<8x8xf32>
    %71 = arith.truncf %70 : vector<8x8xf32> to vector<8x8xbf16>
    %72 = vector.extract_strided_slice %16 {offsets = [0, 16], sizes = [8, 8], strides = [1, 1]} : vector<8x32xf32> to vector<8x8xf32>
    %73 = arith.truncf %72 : vector<8x8xf32> to vector<8x8xbf16>
    %cst_30 = arith.constant dense<0.000000e+00> : vector<8x8xf32>
    %74 = tpu.matmul %69, %71, %cst_30 {dimension_numbers = #tpu.dot_dimension_numbers<[1], [1], [0], [0], [0, 0, 1, 0], [], []>} : vector<8x8xbf16>, vector<8x8xbf16>, vector<8x8xf32> -> vector<8x8xf32>
    %cst_31 = arith.constant -1.000000e+06 : f32
    %75 = vector.broadcast %cst_31 : f32 to vector<8x8xf32>
    %76 = arith.select %23, %74, %75 : vector<8x8xi1>, vector<8x8xf32>
    %cst_32 = arith.constant dense<0xFF800000> : vector<8xf32>
    %77 = vector.multi_reduction <maximumf>, %76, %cst_32 [1] : vector<8x8xf32> to vector<8xf32>
    %78 = vector.shape_cast %77 : vector<8xf32> to vector<8x1xf32>
    %79 = vector.broadcast %78 : vector<8x1xf32> to vector<8x8xf32>
    %80 = arith.subf %76, %79 : vector<8x8xf32>
    %81 = math.exp %80 : vector<8x8xf32>
    %cst_33 = arith.constant dense<0.000000e+00> : vector<8xf32>
    %82 = vector.multi_reduction <add>, %81, %cst_33 [1] : vector<8x8xf32> to vector<8xf32>
    %83 = vector.shape_cast %82 : vector<8xf32> to vector<8x1xf32>
    %84 = tpu.reciprocal %83 {approx = true} : vector<8x1xf32> -> vector<8x1xf32>
    %85 = vector.broadcast %84 : vector<8x1xf32> to vector<8x8xf32>
    %86 = arith.mulf %81, %85 : vector<8x8xf32>
    %87 = arith.truncf %86 : vector<8x8xf32> to vector<8x8xbf16>
    %cst_34 = arith.constant dense<0.000000e+00> : vector<8x8xf32>
    %88 = tpu.matmul %87, %73, %cst_34 {dimension_numbers = #tpu.dot_dimension_numbers<[1], [0], [0], [1], [0, 0, 1, 1], [], []>} : vector<8x8xbf16>, vector<8x8xbf16>, vector<8x8xf32> -> vector<8x8xf32>
    %c0_35 = arith.constant 0 : index
    %c16 = arith.constant 16 : index
    %89 = vector.load %arg10[%c0_35, %c16] : memref<8x32xf32, #tpu.memory_space<vmem>>, vector<8x8xf32>
    tpu.vector_store %arg10[%c0_35, %c16], %88 {strides = array<i32>} : memref<8x32xf32, #tpu.memory_space<vmem>>, vector<8x8xf32>,
    %90 = vector.extract_strided_slice %12 {offsets = [0, 24], sizes = [8, 8], strides = [1, 1]} : vector<8x32xf32> to vector<8x8xf32>
    %91 = arith.truncf %90 : vector<8x8xf32> to vector<8x8xbf16>
    %92 = vector.extract_strided_slice %14 {offsets = [0, 24], sizes = [8, 8], strides = [1, 1]} : vector<8x32xf32> to vector<8x8xf32>
    %93 = arith.truncf %92 : vector<8x8xf32> to vector<8x8xbf16>
    %94 = vector.extract_strided_slice %16 {offsets = [0, 24], sizes = [8, 8], strides = [1, 1]} : vector<8x32xf32> to vector<8x8xf32>
    %95 = arith.truncf %94 : vector<8x8xf32> to vector<8x8xbf16>
    %cst_36 = arith.constant dense<0.000000e+00> : vector<8x8xf32>
    %96 = tpu.matmul %91, %93, %cst_36 {dimension_numbers = #tpu.dot_dimension_numbers<[1], [1], [0], [0], [0, 0, 1, 0], [], []>} : vector<8x8xbf16>, vector<8x8xbf16>, vector<8x8xf32> -> vector<8x8xf32>
    %cst_37 = arith.constant -1.000000e+06 : f32
    %97 = vector.broadcast %cst_37 : f32 to vector<8x8xf32>
    %98 = arith.select %23, %96, %97 : vector<8x8xi1>, vector<8x8xf32>
    %cst_38 = arith.constant dense<0xFF800000> : vector<8xf32>
    %99 = vector.multi_reduction <maximumf>, %98, %cst_38 [1] : vector<8x8xf32> to vector<8xf32>
    %100 = vector.shape_cast %99 : vector<8xf32> to vector<8x1xf32>
    %101 = vector.broadcast %100 : vector<8x1xf32> to vector<8x8xf32>
    %102 = arith.subf %98, %101 : vector<8x8xf32>
    %103 = math.exp %102 : vector<8x8xf32>
    %cst_39 = arith.constant dense<0.000000e+00> : vector<8xf32>
    %104 = vector.multi_reduction <add>, %103, %cst_39 [1] : vector<8x8xf32> to vector<8xf32>
    %105 = vector.shape_cast %104 : vector<8xf32> to vector<8x1xf32>
    %106 = tpu.reciprocal %105 {approx = true} : vector<8x1xf32> -> vector<8x1xf32>
    %107 = vector.broadcast %106 : vector<8x1xf32> to vector<8x8xf32>
    %108 = arith.mulf %103, %107 : vector<8x8xf32>
    %109 = arith.truncf %108 : vector<8x8xf32> to vector<8x8xbf16>
    %cst_40 = arith.constant dense<0.000000e+00> : vector<8x8xf32>
    %110 = tpu.matmul %109, %95, %cst_40 {dimension_numbers = #tpu.dot_dimension_numbers<[1], [0], [0], [1], [0, 0, 1, 1], [], []>} : vector<8x8xbf16>, vector<8x8xbf16>, vector<8x8xf32> -> vector<8x8xf32>
    %c0_41 = arith.constant 0 : index
    %c24 = arith.constant 24 : index
    %111 = vector.load %arg10[%c0_41, %c24] : memref<8x32xf32, #tpu.memory_space<vmem>>, vector<8x8xf32>
    tpu.vector_store %arg10[%c0_41, %c24], %110 {strides = array<i32>} : memref<8x32xf32, #tpu.memory_space<vmem>>, vector<8x8xf32>,
    %c0_42 = arith.constant 0 : index
    %c0_43 = arith.constant 0 : index
    %112 = vector.load %arg10[%c0_42, %c0_43] : memref<8x32xf32, #tpu.memory_space<vmem>>, vector<8x32xf32>
    %113 = arith.truncf %112 : vector<8x32xf32> to vector<8x32xbf16>
    %c0_44 = arith.constant 0 : index
    %c0_45 = arith.constant 0 : index
    %114 = vector.load %arg8[%c0_44, %c0_45] : memref<32x32xbf16, #tpu.memory_space<vmem>>, vector<32x32xbf16>
    %cst_46 = arith.constant dense<0.000000e+00> : vector<8x32xf32>
    %115 = tpu.matmul %113, %114, %cst_46 {dimension_numbers = #tpu.dot_dimension_numbers<[1], [0], [0], [1], [0, 0, 1, 1], [], []>} : vector<8x32xbf16>, vector<32x32xbf16>, vector<8x32xf32> -> vector<8x32xf32>
    %116 = vector.shape_cast %115 : vector<8x32xf32> to vector<1x8x32xf32>
    %c0_47 = arith.constant 0 : index
    %c0_48 = arith.constant 0 : index
    %c0_49 = arith.constant 0 : index
    %117 = vector.load %arg9[%c0_47, %c0_48, %c0_49] : memref<1x8x32xf32, #tpu.memory_space<vmem>>, vector<1x8x32xf32>
    tpu.vector_store %arg9[%c0_47, %c0_48, %c0_49], %116 {strides = array<i32>} : memref<1x8x32xf32, #tpu.memory_space<vmem>>, vector<1x8x32xf32>,
    return
  }
  func.func @transform_0(%arg0: i32, %arg1: memref<2xi32, #tpu.memory_space<smem>>) -> (i32, i32, i32) {
    %c0_i32 = arith.constant 0 : i32
    %c0_i32_0 = arith.constant 0 : i32
    %c0_i32_1 = arith.constant 0 : i32
    return %arg0, %c0_i32, %c0_i32_0 : i32, i32, i32
  }
  func.func @transform_1(%arg0: i32, %arg1: memref<2xi32, #tpu.memory_space<smem>>) -> (i32, i32, i32) {
    %c0_i32 = arith.constant 0 : i32
    %c0_i32_0 = arith.constant 0 : i32
    %c0_i32_1 = arith.constant 0 : i32
    return %arg0, %c0_i32, %c0_i32_0 : i32, i32, i32
  }
  func.func @transform_2(%arg0: i32, %arg1: memref<2xi32, #tpu.memory_space<smem>>) -> (i32, i32, i32) {
    %c0_i32 = arith.constant 0 : i32
    %c0_i32_0 = arith.constant 0 : i32
    %c0_i32_1 = arith.constant 0 : i32
    return %arg0, %c0_i32, %c0_i32_0 : i32, i32, i32
  }
  func.func @transform_3(%arg0: i32, %arg1: memref<2xi32, #tpu.memory_space<smem>>) -> (i32, i32) {
    %c0_i32 = arith.constant 0 : i32
    %c0_i32_0 = arith.constant 0 : i32
    %c0_i32_1 = arith.constant 0 : i32
    return %c0_i32, %c0_i32_0 : i32, i32
  }
  func.func @transform_4(%arg0: i32, %arg1: memref<2xi32, #tpu.memory_space<smem>>) -> (i32, i32) {
    %c0_i32 = arith.constant 0 : i32
    %c0_i32_0 = arith.constant 0 : i32
    %c0_i32_1 = arith.constant 0 : i32
    return %c0_i32, %c0_i32_0 : i32, i32
  }
  func.func @transform_5(%arg0: i32, %arg1: memref<2xi32, #tpu.memory_space<smem>>) -> (i32, i32) {
    %c0_i32 = arith.constant 0 : i32
    %c0_i32_0 = arith.constant 0 : i32
    %c0_i32_1 = arith.constant 0 : i32
    return %c0_i32, %c0_i32_0 : i32, i32
  }
  func.func @transform_6(%arg0: i32, %arg1: memref<2xi32, #tpu.memory_space<smem>>) -> (i32, i32) {
    %c0_i32 = arith.constant 0 : i32
    %c0_i32_0 = arith.constant 0 : i32
    %c0_i32_1 = arith.constant 0 : i32
    return %c0_i32, %c0_i32_0 : i32, i32
  }
  func.func @transform_7(%arg0: i32, %arg1: memref<2xi32, #tpu.memory_space<smem>>) -> (i32, i32, i32) {
    %c0_i32 = arith.constant 0 : i32
    %c0_i32_0 = arith.constant 0 : i32
    %c0_i32_1 = arith.constant 0 : i32
    return %arg0, %c0_i32, %c0_i32_0 : i32, i32, i32
  }
}

</mosaic_0001>

<bundles_post_ra>
// kernel: tpu_custom_call.1
= control target key start
LH: loop header
LB: loop body
LE: loop exit
PB: predicated region body
PF: predicated region fallthrough
CT: control target
= control target key end

     0   :  { %s2338_s0 = inlined_call_operand.hbm [shape: s32[2], index: 0, kind: input, shape index: {}]   ;;  %s2339_s1 = inlined_call_operand.hbm [shape: f32[2,8,32], index: 1, kind: input, shape index: {}]   ;;  %s2340_s2 = inlined_call_operand.hbm [shape: f32[2,8,32], index: 2, kind: input, shape index: {}]   ;;  %s2341_s3 = inlined_call_operand.hbm [shape: f32[2,8,32], index: 3, kind: input, shape index: {}]   ;;  %s2342_s4 = inlined_call_operand.hbm [shape: bf16[32,32], index: 4, kind: input, shape index: {}]   ;;  %s2343_s5 = inlined_call_operand.vmem [shape: bf16[32,32], index: 5, kind: input, shape index: {}]   ;;  %s2344_s6 = inlined_call_operand.hbm [shape: bf16[32,32], index: 6, kind: input, shape index: {}]   ;;  %s2345_s7 = inlined_call_operand.hbm [shape: bf16[32,32], index: 7, kind: input, shape index: {}]   ;;  %s2346_s8 = inlined_call_operand.hbm [shape: f32[2,8,32], index: 8, kind: output, shape index: {}]  }
   0x1   :  { %2370 = sst [smem:[#allocation28_spill]] %s2340_s2  ;;  %s1562_s29 = scalar_lea.hbm %s2338_s0, 16 }
   0x2   :  { %2371 = sst [smem:[#allocation29_spill]] %s2342_s4  ;;  %p1563_p0 = scmp.ne.s32.totalorder %s2338_s0, %s1562_s29 }
   0x3   :  { %2372 = sst [smem:[#allocation30_spill]] %s2346_s8  ;;  %p1566_p1 = scmp.lt.u32.totalorder %s1562_s29, %s2338_s0 }
   0x5   :  { %p1568_p2 = pnand %p1566_p1, %p1563_p0 }
   0x7   :  { %1571 = shalt.err (!%p1568_p2)  }
   0x8   :  { %s1828_s12 = smov [#allocation4]  }
   0x9   :  { %14 = dma.hbm_to_smem %s2338_s0, 16, %s1828_s12, [#allocation3] }
   0xa   :  { %1790 = dma.done.wait [#allocation3], 16 }
   0xb   :  { %1791 = vsyncadd [#allocation3], 4294967280 }
   0xc   :  { %16 = sfence }
   0xd   :  { %17 = vsyncpa [#allocation6], 0 }
   0xe   :  { %19 = vsyncpa [#allocation6 + $0x1], 0 }
   0xf   :  { %20 = vsyncpa [#allocation9], 0 }
  0x10   :  { %22 = vsyncpa [#allocation9 + $0x1], 0 }
  0x11   :  { %23 = vsyncpa [#allocation12], 0 }
  0x12   :  { %24 = vsyncpa [#allocation15], 0 }
  0x13   :  { %25 = vsyncpa [#allocation7], 0 }
  0x14   :  { %27 = vsyncpa [#allocation7 + $0x1], 0  ;;  %s1903_s15 = smov 0   ;;  %s1905_s16 = smov 0  }
  0x15   :  { %s1907_s17 = smov 0   ;;  %s1909_s18 = smov 0  }
  0x16 LB: > { %2373 = sst [smem:[#allocation23_spill]] %s1814_s15  ;;  %s1924_s0 = sadd.s32 4294967295, %s1826_s18   ;;  %s1826_s18 = sphi %s1909_s18, %s2412_s18   ;;  %s1822_s17 = sphi %s1907_s17, %s2416_s17   ;;  %s1818_s16 = sphi %s1905_s16, %s2415_s16   ;;  %s1814_s15 = sphi %s1903_s15, %s2414_s15  }
  0x17   : > { %2374 = sst [smem:[#allocation24_spill]] %s1826_s18  ;;  %s1288_s19 = sadd.s32 4294967294, %s1826_s18  }
  0x18   : > { %p53_p3 = scmp.ne.s32.totalorder %s1818_s16, %s1814_s15  ;;  %p2347_p4 = scmp.eq.s32.totalorder %s1924_s0, 0 }
  0x19   : > { %p219_p6 = scmp.eq.s32.totalorder %s1288_s19, 1  ;;  %p1289_p8 = scmp.ge.s32.totalorder %s1826_s18, 1 }
  0x1a   : > { %p1933_p7 = por %p2347_p4, %p53_p3  ;;  %p226_p10 = scmp.lt.s32.totalorder %s1826_s18, 3 }
  0x1b   : > { %p1938_p9 = por %p219_p6, %p53_p3  ;;  %s1829_s23 = smov [#allocation11]  }
  0x1c   : > { %s2375_s20 = scalar_select %p1933_p7, 1, 0 }
  0x1d   : > { %s2376_s21 = scalar_select %p1938_p9, 1, 0 }
  0x1e   : > { %p1943_p11 = pnand %p1289_p8, %p226_p10  ;;  %s238_s24 = sshll.u32 %s1829_s23, 4  ;;  %s1947_s24 = int_to_ptr.vmem [resolvable:$true] %s238_s24 }
  0x1f   : > { %2377 = sst [smem:[#allocation25_spill]] %s2376_s21  ;;  %s1959_s26 = sadd.s32 1, %s1826_s18  }
  0x20   : > { %s2378_s22 = scalar_select %p1943_p11, 1, 0 }
  0x21   : > { %p1460_p12 = pneg %p1943_p11  ;;  %2380 = sst [smem:[#allocation26_spill]] %s1959_s26 }
  0x22   : > { %s40_s27 = sadd.s32 1, %s1822_s17  ;;  %s37_s28 = ssub.s32 %s1826_s18, %s1959_s26 }
  0x23   : > { %p1954_p0 = pnand %p1460_p12, %p2347_p4  ;;  %s2381_s4 = sld [smem:[#allocation29_spill]] }
  0x25   : > { %s2379_s25 = scalar_select %p1954_p0, 1, 0 }
  0x26   : > { %p1972_p2 = pneg %p1954_p0 }
  0x28   : > { %s2382_s12 = scalar_select %p1972_p2, 1, 0 }
  0x29   : > { %s1572_s9 = scalar_lea.hbm %s2381_s4, 256 }
  0x2a   : > { %p1573_p1 = scmp.ne.s32.totalorder %s2381_s4, %s1572_s9  ;;  %p1579_p8 = scmp.lt.u32.totalorder %s1572_s9, %s2381_s4 }
  0x2c   : > { %p1575_p3 = pnand %p1972_p2, %p1573_p1 }
  0x2e   : > { %p1576_p6 = pneg %p1575_p3 }
  0x30   : > { %p1581_p10 = pnand %p1579_p8, %p1576_p6 }
  0x32   : > { %1584 = shalt.err (!%p1581_p10)
}
  0x33   : > { %s1585_s19 = scalar_lea.vmem %s1947_s24, 256  ;;  %p1593_p5 = scmp.lt.s32.totalorder %s1947_s24, %s1947_s24 }
  0x34   : > { %p1586_p12 = scmp.ne.s32.totalorder %s1947_s24, %s1585_s19  ;;  %p1594_p9 = scmp.lt.s32.totalorder %s1585_s19, %s1585_s19 }
  0x36   : > { %p1588_p13 = pnand %p1586_p12, %p1972_p2  ;;  %p1595_p1 = por %p1594_p9, %p1593_p5 }
  0x38   : > { %p1589_p4 = pneg %p1588_p13 }
  0x3a   : > { %p1596_p3 = pnand %p1595_p1, %p1589_p4 }
  0x3c   : > { %1599 = shalt.err (!%p1596_p3)
}
  0x3d   : > { %s2348_s23 = smov 64   ;;  %s2350_s29 = smov 4  }
  0x3e   : > { %1463 = dma.hbm_to_vmem [thread:$0]  (!%p1954_p0), %s2381_s4, 256, %s1947_s24, [#allocation12], %s2348_s23, %s2348_s23, %s2350_s29  }
  0x3f   : > { %p38_p4 = scmp.eq.s32.totalorder %s37_s28, 0  ;;  %p47_p5 = scmp.ne.s32.totalorder %s1822_s17, %s1818_s16 }
  0x40   : > { %p48_p9 = scmp.eq.s32.totalorder %s1826_s18, 0  ;;  %p1487_p13 = scmp.lt.s32.totalorder %s1826_s18, 2 }
  0x41   : > { %s2001_s10 = scalar_select %p38_p4, %s1822_s17, %s40_s27  }
  0x42   : > { %p49_p6 = por %p48_p9, %p47_p5  ;;  %p2384_p8 = scmp.eq.s32.totalorder %s1924_s0, 1 }
  0x43   : > { %2383 = sst [smem:[#allocation27_spill]] %s2001_s10  ;;  %s2352_s13 = sand.u32 1, %s1822_s17  }
  0x44   : > { %p2005_p10 = por %p2384_p8, %p47_p5  ;;  %s2011_s14 = sshll.u32 %s1826_s18, 7 }
  0x45   : > { %s2015_s19 = sshll.u32 %s2352_s13, 3  ;;  %p2017_p12 = pnand %p1487_p13, %p49_p6 }
  0x46   : > { %s2385_s11 = scalar_select %p2005_p10, 1, 0 }
  0x47   : > { %s2386_s24 = scalar_select %p2017_p12, 1, 0 }
  0x48   : > { %s299_s27 = sand.u32 1, %s1826_s18   ;;  %s2387_s2 = sld [smem:[#allocation28_spill]] }
  0x49   : > { %s303_s23 = scalar_lea.vmem [#allocation8], %s2015_s19  ;;  %s2031_s13 = scalar_lea.sflag [#allocation9], %s299_s27 }
  0x4a   : > { %s310_s29 = sshll.u32 %s303_s23, 4  ;;  %p2037_p3 = pneg %p2017_p12  ;;  %s2029_s29 = int_to_ptr.vmem [resolvable:$true] %s310_s29 }
  0x4c   : > { %s2388_s10 = scalar_select %p2037_p3, 1, 0 }
  0x4e   : > { %s2026_s9 = scalar_lea.hbm %s2387_s2, %s2011_s14  ;;  %s1605_s26 = scalar_lea.hbm %s2387_s2, 256 }
  0x4f   : > { %s1600_s4 = scalar_lea.hbm %s2026_s9, 128  ;;  %p1606_p9 = scmp.lt.u32.totalorder %s2026_s9, %s2387_s2 }
  0x50   : > { %p1601_p1 = scmp.ne.s32.totalorder %s2026_s9, %s1600_s4  ;;  %p1607_p13 = scmp.lt.u32.totalorder %s1605_s26, %s1600_s4 }
  0x51   : > { %p1609_p8 = scmp.lt.u32.totalorder %s1600_s4, %s2026_s9 }
  0x52   : > { %p1603_p4 = pnand %p2037_p3, %p1601_p1  ;;  %p1608_p6 = por %p1607_p13, %p1606_p9 }
  0x54   : > { %p1604_p5 = pneg %p1603_p4  ;;  %p1610_p10 = por %p1609_p8, %p1608_p6 }
  0x56   : > { %p1611_p7 = pnand %p1610_p10, %p1604_p5 }
  0x58   : > { %1614 = shalt.err (!%p1611_p7)
}
  0x59   : > { %s1615_s27 = scalar_lea.vmem %s2029_s29, 128  ;;  %s1832_s28 = smov [#allocation8]  }
  0x5a   : > { %p1616_p1 = scmp.ne.s32.totalorder %s2029_s29, %s1615_s27  ;;  %s1620_s30 = sshll.u32 %s1832_s28, 4  ;;  %s1621_s30 = int_to_ptr.vmem [resolvable:$false] %s1620_s30 }
  0x5b   : > { %s1622_s18 = scalar_lea.vmem %s1621_s30, 256  ;;  %p1623_p0 = scmp.lt.s32.totalorder %s2029_s29, %s1621_s30 }
  0x5c   : > { %p1618_p4 = pnand %p1616_p1, %p2037_p3  ;;  %p1624_p2 = scmp.lt.s32.totalorder %s1622_s18, %s1615_s27 }
  0x5e   : > { %p1619_p11 = pneg %p1618_p4  ;;  %p1625_p9 = por %p1624_p2, %p1623_p0 }
  0x60   : > { %p1626_p13 = pnand %p1625_p9, %p1619_p11 }
  0x62   : > { %1629 = shalt.err (!%p1626_p13)
}
  0x63   : > { %1476 = dma.hbm_to_vmem [thread:$0]  (!%p2017_p12), %s2026_s9, 128, %s2029_s29, %s2031_s13  }
  0x64   : > { %s1833_s4 = smov [#allocation13]   ;;  %s1834_s23 = smov [#allocation14]  }
  0x65   : > { %s254_s26 = sshll.u32 %s1833_s4, 4  ;;  %s267_s2 = sshll.u32 %s1834_s23, 4  ;;  %s255_s26 = int_to_ptr.vmem [resolvable:$true] %s254_s26  ;;  %s268_s2 = int_to_ptr.vmem [resolvable:$true] %s267_s2 }
  0x66   : > { %s1630_s30 = scalar_lea.hbm %s2344_s6, 256  ;;  %p2389_p11 = scmp.ne.s32.totalorder %s2382_s12, 0 }
  0x67   : > { %p1631_p7 = scmp.ne.s32.totalorder %s2344_s6, %s1630_s30  ;;  %p1637_p10 = scmp.lt.u32.totalorder %s1630_s30, %s2344_s6 }
  0x69   : > { %p1633_p0 = pnand %p1631_p7, %p2389_p11 }
  0x6b   : > { %p1634_p2 = pneg %p1633_p0 }
  0x6d   : > { %p1639_p5 = pnand %p1637_p10, %p1634_p2 }
  0x6f   : > { %1642 = shalt.err (!%p1639_p5)
}
  0x70   : > { %s1643_s29 = scalar_lea.vmem %s255_s26, 256  ;;  %p1651_p4 = scmp.lt.s32.totalorder %s255_s26, %s255_s26 }
  0x71   : > { %p1644_p6 = scmp.ne.s32.totalorder %s255_s26, %s1643_s29  ;;  %p1652_p9 = scmp.lt.s32.totalorder %s1643_s29, %s1643_s29 }
  0x73   : > { %p1646_p8 = pnand %p1644_p6, %p2389_p11  ;;  %p1653_p13 = por %p1652_p9, %p1651_p4 }
  0x75   : > { %p1647_p1 = pneg %p1646_p8 }
  0x77   : > { %p1654_p12 = pnand %p1653_p13, %p1647_p1 }
  0x79   : > { %1657 = shalt.err (!%p1654_p12)
}
  0x7a   : > { %p2390_p7 = scmp.ne.s32.totalorder %s2379_s25, 0  ;;  %s2391_s21 = smov 4  }
  0x7b   : > { %s2392_s9 = smov 64   ;;  %s1658_s28 = scalar_lea.hbm %s2345_s7, 256 }
  0x7c   : > { %1466 = dma.hbm_to_vmem [thread:$0]  (!%p2390_p7), %s2344_s6, 256, %s255_s26, [#allocation12], %s2392_s9, %s2392_s9, %s2391_s21  }
  0x7d   : > { %p1659_p0 = scmp.ne.s32.totalorder %s2345_s7, %s1658_s28  ;;  %p1665_p10 = scmp.lt.u32.totalorder %s1658_s28, %s2345_s7 }
  0x7f   : > { %p1661_p12 = pnand %p1659_p0, %p2389_p11 }
  0x81   : > { %p1662_p2 = pneg %p1661_p12 }
  0x83   : > { %p1667_p5 = pnand %p1665_p10, %p1662_p2 }
  0x85   : > { %1670 = shalt.err (!%p1667_p5)
}
  0x86   : > { %s1671_s8 = scalar_lea.vmem %s268_s2, 256  ;;  %p1679_p4 = scmp.lt.s32.totalorder %s268_s2, %s268_s2 }
  0x87   : > { %p1672_p6 = scmp.ne.s32.totalorder %s268_s2, %s1671_s8  ;;  %p1680_p9 = scmp.lt.s32.totalorder %s1671_s8, %s1671_s8 }
  0x89   : > { %p1674_p8 = pnand %p1672_p6, %p2389_p11  ;;  %p1681_p13 = por %p1680_p9, %p1679_p4 }
  0x8b   : > { %p1675_p1 = pneg %p1674_p8 }
  0x8d   : > { %p1682_p3 = pnand %p1681_p13, %p1675_p1 }
  0x8f   : > { %1685 = shalt.err (!%p1682_p3)
}
  0x90   : > { %1469 = dma.hbm_to_vmem [thread:$0]  (!%p2390_p7), %s2345_s7, 256, %s268_s2, [#allocation15], %s2392_s9, %s2392_s9, %s2391_s21  }
  0x91   : > { %s2107_s23 = scalar_lea.hbm %s2339_s1, %s2011_s14  ;;  %s285_s25 = scalar_lea.vmem [#allocation5], %s2015_s19 }
  0x92   : > { %s292_s28 = sshll.u32 %s285_s25, 4  ;;  %s2116_s18 = scalar_lea.hbm %s2341_s3, %s2011_s14  ;;  %s2110_s28 = int_to_ptr.vmem [resolvable:$true] %s292_s28 }
  0x93   : > { %s2393_s29 = sand.u32 1, %s1822_s17   ;;  %s1686_s21 = scalar_lea.hbm %s2107_s23, 128 }
  0x94   : > { %s282_s2 = scalar_lea.sflag [#allocation6], %s2393_s29  ;;  %p1687_p3 = scmp.ne.s32.totalorder %s2107_s23, %s1686_s21 }
  0x95   : > { %p2394_p11 = scmp.ne.s32.totalorder %s2388_s10, 0  ;;  %s1691_s26 = scalar_lea.hbm %s2339_s1, 256 }
  0x96   : > { %p1692_p12 = scmp.lt.u32.totalorder %s2107_s23, %s2339_s1  ;;  %p1693_p2 = scmp.lt.u32.totalorder %s1691_s26, %s1686_s21 }
  0x97   : > { %p1689_p7 = pnand %p1687_p3, %p2394_p11  ;;  %p1695_p5 = scmp.lt.u32.totalorder %s1686_s21, %s2107_s23 }
  0x98   : > { %p1694_p10 = por %p1693_p2, %p1692_p12 }
  0x99   : > { %p1690_p0 = pneg %p1689_p7 }
  0x9a   : > { %p1696_p6 = por %p1695_p5, %p1694_p10 }
  0x9c   : > { %p1697_p8 = pnand %p1696_p6, %p1690_p0 }
  0x9e   : > { %1700 = shalt.err (!%p1697_p8)
}
  0x9f   : > { %s1701_s14 = scalar_lea.vmem %s2110_s28, 128  ;;  %s1835_s4 = smov [#allocation5]  }
  0xa0   : > { %p1702_p1 = scmp.ne.s32.totalorder %s2110_s28, %s1701_s14  ;;  %s1706_s25 = sshll.u32 %s1835_s4, 4  ;;  %s1707_s25 = int_to_ptr.vmem [resolvable:$false] %s1706_s25 }
  0xa1   : > { %s1708_s30 = scalar_lea.vmem %s1707_s25, 256  ;;  %p1709_p13 = scmp.lt.s32.totalorder %s2110_s28, %s1707_s25 }
  0xa2   : > { %p1704_p4 = pnand %p1702_p1, %p2394_p11  ;;  %p1710_p3 = scmp.lt.s32.totalorder %s1708_s30, %s1701_s14 }
  0xa4   : > { %p1705_p9 = pneg %p1704_p4  ;;  %p1711_p7 = por %p1710_p3, %p1709_p13 }
  0xa6   : > { %p1712_p12 = pnand %p1711_p7, %p1705_p9 }
  0xa8   : > { %1715 = shalt.err (!%p1712_p12)
}
  0xa9   : > { %p2395_p0 = scmp.ne.s32.totalorder %s2386_s24, 0  ;;  %s321_s27 = scalar_lea.vmem [#allocation10], %s2015_s19 }
  0xaa   : > { %s328_s29 = sshll.u32 %s321_s27, 4  ;;  %s1716_s21 = scalar_lea.hbm %s2116_s18, 128  ;;  %s329_s29 = int_to_ptr.vmem [resolvable:$true] %s328_s29 }
  0xab   : > { %1473 = dma.hbm_to_vmem [thread:$0]  (!%p2395_p0), %s2107_s23, 128, %s2110_s28, %s282_s2  }
  0xac   : > { %p1717_p2 = scmp.ne.s32.totalorder %s2116_s18, %s1716_s21  ;;  %s1721_s26 = scalar_lea.hbm %s2341_s3, 256 }
  0xad   : > { %p1722_p6 = scmp.lt.u32.totalorder %s2116_s18, %s2341_s3  ;;  %p1723_p8 = scmp.lt.u32.totalorder %s1721_s26, %s1716_s21 }
  0xae   : > { %p1719_p10 = pnand %p1717_p2, %p2394_p11  ;;  %p1725_p4 = scmp.lt.u32.totalorder %s1716_s21, %s2116_s18 }
  0xaf   : > { %p1724_p1 = por %p1723_p8, %p1722_p6 }
  0xb0   : > { %p1720_p5 = pneg %p1719_p10 }
  0xb1   : > { %p1726_p9 = por %p1725_p4, %p1724_p1 }
  0xb3   : > { %p1727_p13 = pnand %p1726_p9, %p1720_p5 }
  0xb5   : > { %1730 = shalt.err (!%p1727_p13)
}
  0xb6   : > { %s1731_s19 = scalar_lea.vmem %s329_s29, 128  ;;  %s1836_s23 = smov [#allocation10]  }
  0xb7   : > { %p1732_p3 = scmp.ne.s32.totalorder %s329_s29, %s1731_s19  ;;  %s1736_s28 = sshll.u32 %s1836_s23, 4  ;;  %s1737_s28 = int_to_ptr.vmem [resolvable:$false] %s1736_s28 }
  0xb8   : > { %s1738_s2 = scalar_lea.vmem %s1737_s28, 256  ;;  %p1739_p2 = scmp.lt.s32.totalorder %s329_s29, %s1737_s28 }
  0xb9   : > { %p1734_p7 = pnand %p1732_p3, %p2394_p11  ;;  %p1740_p10 = scmp.lt.s32.totalorder %s1738_s2, %s1731_s19 }
  0xbb   : > { %p1735_p12 = pneg %p1734_p7  ;;  %p1741_p0 = por %p1740_p10, %p1739_p2 }
  0xbd   : > { %p1742_p6 = pnand %p1741_p0, %p1735_p12 }
  0xbf   : > { %1745 = shalt.err (!%p1742_p6)
}
  0xc0   : > { %p2396_p8 = scmp.ne.s32.totalorder %s2386_s24, 0  ;;  %p2397_p5 = scmp.ne.s32.totalorder %s2378_s22, 0 }
  0xc1   : > { %s2163_s10 = sand.u32 (!%p2397_p5), 1, %s1818_s16   ;;  %p2398_p11 = scmp.ne.s32.totalorder (!%p2397_p5), %s2375_s20, 0 }
  0xc2   : > { %1479 = dma.hbm_to_vmem [thread:$0]  (!%p2396_p8), %s2116_s18, 128, %s329_s29, %s2031_s13  }
  0xc3   : > { %337 = sbr.rel (%p2397_p5) target bundleno = 1669 (0x685), region = 48  ;;  %s2166_s14 = sshll.u32 (!%p2397_p5), %s2163_s10, 3 }
  0xc4   : > { %s340_s4 = scalar_lea.sflag (!%p2397_p5), [#allocation6], %s2163_s10  ;;  %s343_s25 = scalar_lea.vmem (!%p2397_p5), [#allocation5], %s2166_s14 }
  0xca   : > { %1793 = dma.done.wait (%p2398_p11), %s340_s4, 128  }
  0xcb   : > { %1795 = vsyncadd (%p2398_p11), %s340_s4, 4294967168  ;;  %s348_s22 = sand.u32 1, %s1924_s0   ;;  %s352_s24 = scalar_lea.vmem [#allocation8], %s2166_s14 }
  0xcc   : > { %s349_s13 = scalar_lea.sflag [#allocation9], %s348_s22 }
  0xcd   : > { %1797 = dma.done.wait (%p2398_p11), %s349_s13, 256  }
  0xce   : > { %1799 = vsyncadd (%p2398_p11), %s349_s13, 4294967040  ;;  %s361_s18 = scalar_lea.vmem [#allocation10], %s2166_s14  ;;  %p2399_p0 = scmp.eq.s32.totalorder %s1924_s0, 0 }
  0xd0   : > { %1801 = dma.done.wait (%p2399_p0), [#allocation12], 512   ;;  %p2400_p1 = pmov %p2399_p0 }
  0xd1   : > { %p2401_p4 = pmov %p2399_p0 }
  0xd2   : > { %1803 = vsyncadd (%p2400_p1), [#allocation12], 4294966784 }
  0xd3   : > { %1805 = dma.done.wait (%p2401_p4), [#allocation15], 256   ;;  %p2402_p9 = pmov %p2399_p0 }
  0xd4   : > { %v1837_v0 = vmov 0.0   ;;  %vm1838_vm0 = vmmov 0   ;;  %v1538_v1 = vld [vmem:[%s2343_s5] sm:$0xff]   ;;  %v1539_v2 = vld [vmem:[#allocation11] sm:$0xff]   ;;  %v1541_v4 = vld [vmem:[#allocation11 + $0x8] sm:$0xff]   ;;  %vm437_vm1 = vcmask 261120   ;;  %v600_v34 = vlaneseq }
  0xd5   : > { %1807 = vsyncadd (%p2402_p9), [#allocation15], 4294967040  ;;  %1368 = vmatprep.subr.bf16.mxu1 %v1837_v0  ;;  %1360 = vmatprep.subr.bf16.mxu0 %v1837_v0  ;;  %v1540_v3 = vld [vmem:[%s2343_s5 + $0x8] sm:$0xff]   ;;  %v415_v6 = vld [vmem:[%s343_s25] sm:$0xff]  ;;  %vm608_vm2 = vcmask 64512   ;;  %s1839_s21 = smov 112  }
  0xd6   : > { %1372 = vmatprep.mubr.msk.bf16.mxu1 %vm1838_vm0, %v1837_v0  ;;  %1364 = vmatprep.mubr.msk.bf16.mxu0 %vm1838_vm0, %v1837_v0  ;;  %v417_v5 = vld [vmem:[%s352_s24] sm:$0xff]  ;;  %v416_v8 = vpack.c.bf16 %v415_v6, %v415_v6  ;;  %s1840_s9 = smov 120   ;;  %s1841_s8 = smov 104   ;;  %v1542_v21 = vld [vmem:[#allocation13] sm:$0xff]   ;;  %v1543_v22 = vld [vmem:[#allocation13 + $0x8] sm:$0xff]   ;;  %v601_v35 = vand.u32 127, %v600_v34 }
  0xd7   : > { %1369 = vmatpush3.bf16.msra.mxu1 %v1538_v1  ;;  %1361 = vmatpush3.bf16.msra.mxu0 %v1539_v2  ;;  %v418_v7 = vpack.c.bf16 %v417_v5, %v417_v5  ;;  %v419_v23 = vld [vmem:[%s361_s18] sm:$0xff]  ;;  %s602_s26 = sld [smem:[#allocation4 + %s1924_s0]]  ;;  %vm671_vm4 = vcmask 1043456   ;;  %s1842_s15 = smov 8   ;;  %vm834_vm5 = vcmask 130112   ;;  %vm951_vm6 = vcmask 195712  }
  0xd8   : > { %1370 = vmatprep.subr.bf16.mxu1 %v1837_v0  ;;  %1362 = vmatprep.subr.bf16.mxu0 %v1837_v0  ;;  %v420_v24 = vpack.c.bf16 %v419_v23, %v419_v23  ;;  %s1843_s12 = smov 16   ;;  %s1844_s19 = smov 24   ;;  %vm1068_vm7 = vcmask 261312  }
  0xd9   : > { %s1329_s23 = sshll.u32 %s1924_s0, 7  ;;  %s413_s28 = scalar_lea.vmem [#allocation16], %s2166_s14 }
  0xda   : > { %s1146_s2 = sshll.u32 %s413_s28, 4  ;;  %s2405_s22 = sld [smem:[#allocation30_spill]]  ;;  %s2295_s2 = int_to_ptr.vmem [resolvable:$true] %s1146_s2 }
  0xdb   : > { %1371 = vmatpush3.bf16.msra.mxu1 %v1540_v3  ;;  %1363 = vmatpush3.bf16.msra.mxu0 %v1541_v4  ;;  %s1133_s24 = scalar_lea.sflag [#allocation7], %s2163_s10  ;;  %s1746_s18 = scalar_lea.vmem %s2295_s2, 128 }
  0xdc   : > { %1384 = vmatprep.subr.bf16.mxu1 %v1837_v0  ;;  %1376 = vmatprep.subr.bf16.mxu0 %v1837_v0  ;;  %p1747_p13 = scmp.ne.s32.totalorder %s2295_s2, %s1746_s18  ;;  %p2406_p3 = scmp.ne.s32.totalorder %s2385_s11, 0 }
  0xdd   : > { %v603_v36 = vstv %s602_s26  ;;  %s1845_s0 = smov [#allocation16]  }
  0xde   : > { %1373 = vmatmul.mubr.msk.bf16.vlgmr.msra.gmra.mrb[0].mxu1 %vm437_vm1, %v418_v7  ;;  %1365 = vmatmul.mubr.msk.bf16.vlgmr.msra.gmra.mrb[0].mxu0 %vm437_vm1, %v416_v8  ;;  %vm2245_vm3 = vcmp.lt.s32.totalorder %v601_v35, %v603_v36  ;;  %p1748_p7 = pnand %p1747_p13, %p2406_p3  ;;  %s1750_s14 = sshll.u32 %s1845_s0, 4  ;;  %s1751_s14 = int_to_ptr.vmem [resolvable:$false] %s1750_s14 }
  0xdf   : > { %1386 = vmatprep.mubr.msk.bf16.mxu1 %vm1838_vm0, %v1837_v0  ;;  %1380 = vmatprep.mubr.msk.bf16.mxu0 %vm1838_vm0, %v1837_v0  ;;  %s1752_s20 = scalar_lea.vmem %s1751_s14, 256  ;;  %p1753_p2 = scmp.lt.s32.totalorder %s2295_s2, %s1751_s14 }
  0xe0   : > { %1377 = vmatpush3.bf16.msra.mxu0 %v1542_v21  ;;  %s2293_s13 = scalar_lea.hbm %s2405_s22, %s1329_s23  ;;  %p1749_p12 = pneg %p1748_p7 }
  0xe1   : > { %1378 = vmatprep.subr.bf16.mxu0 %v1837_v0  ;;  %p1754_p10 = scmp.lt.s32.totalorder %s1752_s20, %s1746_s18 }
  0xe3   : > { %p1755_p6 = por %p1754_p10, %p1753_p2 }
  0xe4   : > { %1379 = vmatpush3.bf16.msra.mxu0 %v1543_v22 }
  0xe5   : > { %1390 = vmatprep.subr.bf16.mxu0 %v1837_v0  ;;  %p1756_p8 = pnand %p1755_p6, %p1749_p12 }
  0xe7   : > { %1381 = vmatmul.mubr.msk.bf16.vlgmr.msra.gmra.mrb[4].mxu0 %vm437_vm1, %v420_v24 }
  0xe8   : > { %1392 = vmatprep.mubr.msk.bf16.mxu0 %vm1838_vm0, %v1837_v0 }
 0x1b1   : > { %v535_v9 = vpop.f32.mrb[0].mxu1  ;;  %v475_v12 = vpop.f32.mrb[0].mxu0 }
 0x1b2   : > { %v606_v10 = vpack.c.bf16 %v535_v9, %v535_v9  ;;  %v1374_v11 = vpop.f32.mrb[1].mxu1  ;;  %v481_v13 = vmul.f32 0.35355338, %v475_v12  ;;  %v1366_v15 = vpop.f32.mrb[1].mxu0 }
 0x1b3   : > { %v538_v14 = vpop.f32.mrb[2].mxu1  ;;  %v478_v18 = vpop.f32.mrb[2].mxu0 }
 0x1b4   : > { %838 = vrot.lane.b32.xlu1 %v606_v10, %s1839_s21  ;;  %720 = vrot.lane.b32.xlu0 %v606_v10, %s1840_s9  ;;  %v1375_v16 = vpop.f32.mrb[3].mxu1  ;;  %v613_v17 = vsel %vm608_vm2, %v606_v10, 0  ;;  %v605_v19 = vpack.c.bf16 %v481_v13, %v481_v13  ;;  %v1367_v20 = vpop.f32.mrb[3].mxu0 }
 0x1b5   : > { %1385 = vmatpush3.bf16.xpose.msra.mxu1 %v613_v17 }
 0x1b6   : > { %1396 = vmatprep.subr.bf16.mxu1 %v1837_v0 }
 0x1b8   : > { %836 = vrot.lane.b32.xlu1 %v605_v19, %s1839_s21  ;;  %717 = vrot.lane.b32.xlu0 %v605_v19, %s1840_s9 }
 0x1ba   : > { %v594_v44 = vpop.f32.mrb[4].mxu0 }
 0x1bb   : > { %v607_v45 = vpack.c.bf16 %v594_v44, %v594_v44  ;;  %v1382_v46 = vpop.f32.mrb[5].mxu0 }
 0x1bc   : > { %953 = vrot.lane.b32.xlu1 %v605_v19, %s1841_s8  ;;  %955 = vrot.lane.b32.xlu0 %v606_v10, %s1841_s8  ;;  %v597_v47 = vpop.f32.mrb[6].mxu0 }
 0x1bd   : > { %1387 = vmatmul.mubr.msk.bf16.vlgmr.msra.gmra.mrb[4].mxu1 %vm608_vm2, %v605_v19  ;;  %v1383_v48 = vpop.f32.mrb[7].mxu0  ;;  %v673_v49 = vsel %vm671_vm4, %v607_v45, 0 }
 0x1be   : > { %1398 = vmatprep.mubr.msk.bf16.mxu1 %vm1838_vm0, %v1837_v0  ;;  %1391 = vmatpush3.bf16.msra.mxu0 %v673_v49 }
 0x1bf   : > { %1402 = vmatprep.subr.bf16.mxu0 %v1837_v0 }
 0x226   : > { %v721_v25 = vpop.permute.xlu0 %720  ;;  %v839_v27 = vpop.permute.xlu1 %838 }
 0x227   : > { %v726_v26 = vsel %vm608_vm2, %v721_v25, 0  ;;  %v844_v29 = vsel %vm608_vm2, %v839_v27, 0 }
 0x228   : > { %1397 = vmatpush3.bf16.xpose.msra.mxu1 %v726_v26 }
 0x229   : > { %1408 = vmatprep.subr.bf16.mxu1 %v1837_v0 }
 0x22a   : > { %v718_v28 = vpop.permute.xlu0 %717  ;;  %v837_v31 = vpop.permute.xlu1 %836 }
 0x22e   : > { %v956_v30 = vpop.permute.xlu0 %955  ;;  %v954_v33 = vpop.permute.xlu1 %953 }
 0x22f   : > { %1399 = vmatmul.mubr.msk.bf16.vlgmr.msra.gmra.mrb[8].mxu1 %vm608_vm2, %v718_v28  ;;  %v961_v32 = vsel %vm608_vm2, %v956_v30, 0 }
 0x230   : > { %1409 = vmatpush3.bf16.xpose.msra.mxu1 %v844_v29  ;;  %1410 = vmatprep.mubr.msk.bf16.mxu1 %vm1838_vm0, %v1837_v0 }
 0x231   : > { %1420 = vmatprep.subr.bf16.mxu1 %v1837_v0 }
 0x237   : > { %1411 = vmatmul.mubr.msk.bf16.vlgmr.msra.gmra.mrb[12].mxu1 %vm608_vm2, %v837_v31 }
 0x238   : > { %1421 = vmatpush3.bf16.xpose.msra.mxu1 %v961_v32  ;;  %1422 = vmatprep.mubr.msk.bf16.mxu1 %vm1838_vm0, %v1837_v0 }
 0x239   : > { %1432 = vmatprep.subr.bf16.mxu1 %v1837_v0 }
 0x23f   : > { %1423 = vmatmul.mubr.msk.bf16.vlgmr.msra.gmra.mrb[16].mxu1 %vm608_vm2, %v954_v33 }
 0x240   : > { %1436 = vmatprep.mubr.msk.bf16.mxu1 %vm1838_vm0, %v1837_v0 }
 0x290   : > { %v649_v38 = vpop.f32.mrb[4].mxu1 }
 0x291   : > { %v655_v39 = vsel %vm2245_vm3, %v649_v38, -1000000.0  ;;  %v1388_v40 = vpop.f32.mrb[5].mxu1 }
 0x292   : > { %v652_v41 = vpop.f32.mrb[6].mxu1  ;;  %v656_v42 = vsel %vm608_vm2, %v655_v39, -inf }
 0x293   : > { %657 = vmax.xlane.f32.xlu0 %v656_v42  ;;  %v1389_v43 = vpop.f32.mrb[7].mxu1 }
 0x302   : > { %v762_v50 = vpop.f32.mrb[8].mxu1 }
 0x303   : > { %v768_v51 = vsel %vm2245_vm3, %v762_v50, -1000000.0  ;;  %v1400_v52 = vpop.f32.mrb[9].mxu1 }
 0x304   : > { %v765_v53 = vpop.f32.mrb[10].mxu1  ;;  %v769_v54 = vsel %vm608_vm2, %v768_v51, -inf }
 0x305   : > { %770 = vmax.xlane.f32.xlu1 %v769_v54  ;;  %v1401_v55 = vpop.f32.mrb[11].mxu1 }
 0x306   : > { %v1544_v55 = vld [vmem:[#allocation14] sm:$0xff]  }
 0x307   : > { %1433 = vmatpush3.bf16.msra.mxu1 %v1544_v55 }
 0x308   : > { %1434 = vmatprep.subr.bf16.mxu1 %v1837_v0 }
 0x30a   : > { %v880_v56 = vpop.f32.mrb[12].mxu1 }
 0x30b   : > { %v886_v57 = vsel %vm2245_vm3, %v880_v56, -1000000.0  ;;  %v1412_v58 = vpop.f32.mrb[13].mxu1  ;;  %v1545_v56 = vld [vmem:[#allocation14 + $0x8] sm:$0xff]  }
 0x30c   : > { %v883_v59 = vpop.f32.mrb[14].mxu1  ;;  %v887_v60 = vsel %vm608_vm2, %v886_v57, -inf  ;;  %1435 = vmatpush3.bf16.msra.mxu1 %v1545_v56 }
 0x30d   : > { %888 = vmax.xlane.f32.xlu0 %v887_v60  ;;  %v1413_v61 = vpop.f32.mrb[15].mxu1 }
 0x312   : > { %v997_v62 = vpop.f32.mrb[16].mxu1 }
 0x313   : > { %v1003_v63 = vsel %vm2245_vm3, %v997_v62, -1000000.0  ;;  %v1424_v1 = vpop.f32.mrb[17].mxu1 }
 0x314   : > { %v1000_v2 = vpop.f32.mrb[18].mxu1  ;;  %v1004_v3 = vsel %vm608_vm2, %v1003_v63, -inf }
 0x315   : > { %1005 = vmax.xlane.f32.xlu0 %v1004_v3  ;;  %v1425_v4 = vpop.f32.mrb[19].mxu1 }
 0x320   : > { %v658_v5 = vpop.xlane.xlu0 %657 }
 0x321   : > { %v659_v6 = vsub.f32 %v655_v39, %v658_v5 }
 0x323   : > { %v660_v7 = vmul.f32 1.442695, %v659_v6 }
 0x325   : > { %1546 = vpow2.f32 %v660_v7 }
 0x32f   : > { %v1547_v8 = vpop.eup %1546 }
 0x330   : > { %v662_v9 = vsel %vm608_vm2, %v1547_v8, 0.0 }
 0x331   : > { %663 = vadd.xlane.f32.xlu1 %v662_v9 }
 0x342   : > { %782 = vrot.lane.b32.xlu1 %v607_v45, %s1840_s9 }
 0x392   : > { %v771_v10 = vpop.xlane.xlu1 %770 }
 0x393   : > { %v772_v11 = vsub.f32 %v768_v51, %v771_v10 }
 0x395   : > { %v773_v12 = vmul.f32 1.442695, %v772_v11 }
 0x397   : > { %1548 = vpow2.f32 %v773_v12 }
 0x39a   : > { %v889_v13 = vpop.xlane.xlu0 %888 }
 0x39b   : > { %v890_v14 = vsub.f32 %v886_v57, %v889_v13 }
 0x39d   : > { %v891_v15 = vmul.f32 1.442695, %v890_v14 }
 0x39f   : > { %1550 = vpow2.f32 %v891_v15 }
 0x3a1   : > { %v1549_v16 = vpop.eup %1548 }
 0x3a2   : > { %v1006_v17 = vpop.xlane.xlu0 %1005  ;;  %v775_v18 = vsel %vm608_vm2, %v1549_v16, 0.0 }
 0x3a3   : > { %v1007_v19 = vsub.f32 %v1003_v63, %v1006_v17  ;;  %776 = vadd.xlane.f32.xlu0 %v775_v18 }
 0x3a5   : > { %v1008_v20 = vmul.f32 1.442695, %v1007_v19 }
 0x3a7   : > { %1552 = vpow2.f32 %v1008_v20 }
 0x3a9   : > { %v1551_v21 = vpop.eup %1550 }
 0x3aa   : > { %v893_v22 = vsel %vm608_vm2, %v1551_v21, 0.0 }
 0x3ab   : > { %894 = vadd.xlane.f32.xlu1 %v893_v22 }
 0x3b1   : > { %v1553_v23 = vpop.eup %1552 }
 0x3b2   : > { %v1010_v24 = vsel %vm608_vm2, %v1553_v23, 0.0 }
 0x3b3   : > { %1011 = vadd.xlane.f32.xlu0 %v1010_v24 }
 0x3bc   : > { %1016 = vrot.lane.b32.xlu1 %v607_v45, %s1841_s8 }
 0x3be   : > { %v664_v25 = vpop.xlane.xlu1 %663 }
 0x3bf   : > { %1554 = vrcp.f32 %v664_v25 }
 0x3c2   : > { %v783_v27 = vpop.permute.xlu1 %782 }
 0x3c3   : > { %v788_v30 = vsel %vm671_vm4, %v783_v27, 0 }
 0x3c9   : > { %v1555_v26 = vpop.eup %1554  ;;  %899 = vrot.lane.b32.xlu0 %v607_v45, %s1839_s21 }
 0x3ca   : > { %v666_v28 = vmul.f32 %v1555_v26, %v1547_v8 }
 0x3cc   : > { %v667_v29 = vpack.c.bf16 %v666_v28, %v666_v28 }
 0x3ce   : > { %1393 = vmatmul.mubr.msk.bf16.vlgmr.msra.gmra.mrb[8].mxu0 %vm608_vm2, %v667_v29 }
 0x3cf   : > { %1403 = vmatpush3.bf16.msra.mxu0 %v788_v30  ;;  %1404 = vmatprep.mubr.msk.bf16.mxu0 %vm1838_vm0, %v1837_v0 }
 0x3d0   : > { %1414 = vmatprep.subr.bf16.mxu0 %v1837_v0 }
 0x430   : > { %v777_v31 = vpop.xlane.xlu0 %776 }
 0x431   : > { %1556 = vrcp.f32 %v777_v31 }
 0x438   : > { %v895_v32 = vpop.xlane.xlu1 %894 }
 0x439   : > { %1558 = vrcp.f32 %v895_v32 }
 0x43b   : > { %v1557_v33 = vpop.eup %1556 }
 0x43c   : > { %v779_v34 = vmul.f32 %v1557_v33, %v1549_v16  ;;  %v1017_v41 = vpop.permute.xlu1 %1016 }
 0x43d   : > { %v1022_v43 = vsel %vm671_vm4, %v1017_v41, 0 }
 0x43e   : > { %v780_v35 = vpack.c.bf16 %v779_v34, %v779_v34 }
 0x440   : > { %v1012_v36 = vpop.xlane.xlu0 %1011  ;;  %1405 = vmatmul.mubr.msk.bf16.vlgmr.msra.gmra.mrb[12].mxu0 %vm608_vm2, %v780_v35 }
 0x441   : > { %1560 = vrcp.f32 %v1012_v36  ;;  %1416 = vmatprep.mubr.msk.bf16.mxu0 %vm1838_vm0, %v1837_v0 }
 0x443   : > { %v1559_v37 = vpop.eup %1558 }
 0x444   : > { %v897_v38 = vmul.f32 %v1559_v37, %v1551_v21  ;;  %v900_v39 = vpop.permute.xlu0 %899 }
 0x445   : > { %v905_v40 = vsel %vm671_vm4, %v900_v39, 0 }
 0x446   : > { %1415 = vmatpush3.bf16.msra.mxu0 %v905_v40  ;;  %v898_v42 = vpack.c.bf16 %v897_v38, %v897_v38 }
 0x447   : > { %1426 = vmatprep.subr.bf16.mxu0 %v1837_v0 }
 0x449   : > { %1417 = vmatmul.mubr.msk.bf16.vlgmr.msra.gmra.mrb[16].mxu0 %vm608_vm2, %v898_v42 }
 0x44a   : > { %1427 = vmatpush3.bf16.msra.mxu0 %v1022_v43  ;;  %1428 = vmatprep.mubr.msk.bf16.mxu0 %vm1838_vm0, %v1837_v0 }
 0x44b   : > { %v1561_v44 = vpop.eup %1560 }
 0x44c   : > { %v1014_v45 = vmul.f32 %v1561_v44, %v1553_v23 }
 0x44e   : > { %v1015_v46 = vpack.c.bf16 %v1014_v45, %v1014_v45 }
 0x451   : > { %1429 = vmatmul.mubr.msk.bf16.vlgmr.msra.gmra.mrb[20].mxu0 %vm608_vm2, %v1015_v46 }
 0x4a1   : > { %v709_v47 = vpop.f32.mrb[8].mxu0 }
 0x4a2   : > { %715 = vst.msk [vmem:[#allocation2] sm:$0xff] %vm608_vm2, %v709_v47  ;;  %v1394_v48 = vpop.f32.mrb[9].mxu0 }
 0x4a3   : > { %v712_v49 = vpop.f32.mrb[10].mxu0 }
 0x4a4   : > { %v1395_v50 = vpop.f32.mrb[11].mxu0 }
 0x513   : > { %v824_v51 = vpop.f32.mrb[12].mxu0 }
 0x514   : > { %831 = vrot.lane.b32.xlu1 %v824_v51, %s1842_s15  ;;  %v1406_v52 = vpop.f32.mrb[13].mxu0 }
 0x515   : > { %v827_v53 = vpop.f32.mrb[14].mxu0 }
 0x516   : > { %v1407_v54 = vpop.f32.mrb[15].mxu0 }
 0x51c   : > { %v941_v57 = vpop.f32.mrb[16].mxu0 }
 0x51d   : > { %948 = vrot.lane.b32.xlu0 %v941_v57, %s1843_s12  ;;  %v1418_v58 = vpop.f32.mrb[17].mxu0 }
 0x51e   : > { %v944_v59 = vpop.f32.mrb[18].mxu0 }
 0x51f   : > { %v1419_v60 = vpop.f32.mrb[19].mxu0 }
 0x524   : > { %v1058_v61 = vpop.f32.mrb[20].mxu0 }
 0x525   : > { %1065 = vrot.lane.b32.xlu1 %v1058_v61, %s1844_s19  ;;  %v1430_v62 = vpop.f32.mrb[21].mxu0 }
 0x526   : > { %v1061_v63 = vpop.f32.mrb[22].mxu0 }
 0x527   : > { %v1431_v1 = vpop.f32.mrb[23].mxu0 }
 0x586   : > { %v832_v2 = vpop.permute.xlu1 %831 }
 0x587   : > { %835 = vst.msk [vmem:[#allocation2] sm:$0xff] %vm834_vm5, %v832_v2 }
 0x58f   : > { %v949_v0 = vpop.permute.xlu0 %948 }
 0x590   : > { %952 = vst.msk [vmem:[#allocation2] sm:$0xff] %vm951_vm6, %v949_v0 }
 0x597   : > { %v1066_v3 = vpop.permute.xlu1 %1065 }
 0x598   : > { %1069 = vst.msk [vmem:[#allocation2] sm:$0xff] %vm1068_vm7, %v1066_v3 }
 0x59f   : > { %v1070_v4 = vld [vmem:[#allocation2] sm:$0xff] }
 0x5a0   : > { %v1071_v5 = vpack.c.bf16 %v1070_v4, %v1070_v4 }
 0x5a2   : > { %1437 = vmatmul.mubr.msk.bf16.vlgmr.msra.gmra.mrb[20].mxu1 %vm437_vm1, %v1071_v5 }
 0x675   : > { %v1125_v6 = vpop.f32.mrb[20].mxu1 }
 0x676   : > { %1131 = vst.msk [vmem:[%s413_s28] sm:$0xff] %vm437_vm1, %v1125_v6  ;;  %v1438_v7 = vpop.f32.mrb[21].mxu1 }
 0x677   : > { %v1128_v8 = vpop.f32.mrb[22].mxu1 }
 0x678   : > { %1759 = shalt.err (!%p1756_p8)
}
 0x679   : > { %s1760_s10 = scalar_lea.hbm %s2293_s13, 128  ;;  %s1764_s29 = scalar_lea.hbm %s2405_s22, 256 }
 0x67a   : > { %p1761_p5 = scmp.ne.s32.totalorder %s2293_s13, %s1760_s10  ;;  %p1765_p1 = scmp.lt.u32.totalorder %s2293_s13, %s2405_s22 }
 0x67b   : > { %p1766_p4 = scmp.lt.u32.totalorder %s1764_s29, %s1760_s10  ;;  %p1768_p13 = scmp.lt.u32.totalorder %s1760_s10, %s2293_s13 }
 0x67c   : > { %p1762_p11 = pnand %p1761_p5, %p2406_p3 }
 0x67d   : > { %p1767_p9 = por %p1766_p4, %p1765_p1 }
 0x67e   : > { %p1763_p0 = pneg %p1762_p11 }
 0x67f   : > { %p1769_p7 = por %p1768_p13, %p1767_p9 }
 0x681   : > { %p1770_p12 = pnand %p1769_p7, %p1763_p0 }
 0x683   : > { %1773 = shalt.err (!%p1770_p12)
}
 0x684   : > { %1458 = dma.vmem_to_hbm [thread:$0]  (%p2406_p3), %s2295_s2, 128, %s2293_s13, %s1133_s24   ;;  %v1439_v9 = vpop.f32.mrb[23].mxu1 }
 0x685 PF: > { %s2407_s8 = sld [smem:[#allocation23_spill]]  ;;  %s2408_s26 = sld [smem:[#allocation25_spill]] }
 0x686   : > { %s2409_s15 = sld [smem:[#allocation24_spill]] }
 0x68b   : > { %s1158_s12 = sand.u32 1, %s2407_s8   ;;  %p2410_p2 = scmp.ne.s32.totalorder %s2408_s26, 0 }
 0x68c   : > { %p2411_p10 = scmp.ge.s32.totalorder %s2409_s15, 2  ;;  %s1159_s19 = scalar_lea.sflag [#allocation7], %s1158_s12 }
 0x68e   : > { %p1481_p6 = pnand %p2411_p10, %p2410_p2 }
 0x690   : > { %1809 = dma.done.wait (!%p1481_p6), %s1159_s19, 128  }
 0x691   : > { %1811 = vsyncadd (!%p1481_p6), %s1159_s19, 4294967168  ;;  %s2412_s18 = sld [smem:[#allocation26_spill]]  ;;  %s2413_s23 = sld [smem:[#allocation27_spill]] }
 0x692   : > { %s2414_s15 = smov %s1818_s16  ;;  %s2415_s16 = smov %s1822_s17 }
 0x697   : > { %p30_p8 = scmp.ge.s32.totalorder %s2412_s18, 4   ;;  %s2416_s17 = smov %s2413_s23 }
 0x699   :  { %32 = sbr.rel (!%p30_p8) target bundleno = 22 (0x16), region = 129 }
 0x6a0   :  { %1164 = vsyncpa [#allocation6], 1 }
 0x6a1   :  { %1166 = vsyncpa [#allocation6 + $0x1], 1 }
 0x6a2   :  { %1167 = vsyncpa [#allocation9], 1 }
 0x6a3   :  { %1169 = vsyncpa [#allocation9 + $0x1], 1 }
 0x6a4   :  { %1170 = vsyncpa [#allocation12], 1 }
 0x6a5   :  { %1171 = vsyncpa [#allocation15], 1 }
 0x6a6   :  { %1172 = vsyncpa [#allocation7], 1 }
 0x6a7   :  { %1174 = vsyncpa [#allocation7 + $0x1], 1 }

</bundles_post_ra>
